<compile_context>
chip_gen: v7x
topology: tpu7x:2x2x1
jax: 0.10.0
libtpu: 0.0.40
codegen_flags: <defaults>
</compile_context>

<pallas_src>
import functools

import jax
import jax.numpy as jnp
from jax.experimental import pallas as pl
from jax.experimental.pallas import tpu as pltpu

_LANE = 128


def _round_up(n, m):
    return ((n + m - 1) // m) * m


def _detect_num_tensorcores():
    """Best-effort TensorCores-per-device count (2 on v4/v5p/v7x, else 1)."""
    try:
        dev = jax.devices()[0]
        if dev.platform != "tpu":
            return 1
        kind = str(getattr(dev, "device_kind", "")).lower()
        if any(tag in kind for tag in ("v4", "v5p", "v7", "7x")):
            return 2
        return 1
    except Exception:  # detection is only a perf hint; never fail on it
        return 1


def _choose_batch_tile(B, block_batch, num_cores):
    """Pick the batch tile.

    Multi-step tiles are multiples of 128 so both the (tb, D) x tile (sublane
    dim) and the lane-dense (1, tb) output tile satisfy the (8, 128) rule; a
    single-step kernel uses tb == B (block == full array dims, always legal).
    """
    # v7x VMEM ceiling: keep the f32 (tb, 512) h1 intermediate + double-buffered
    # tiles well under the 32 MiB scoped default (64 MiB physical).  Raise this
    # clamp together with vmem_limit_bytes if bigger tiles are ever wanted.
    block_batch = max(_LANE, min(_round_up(block_batch, _LANE), 4096))
    if B <= block_batch:
        if num_cores > 1:
            per_core = _round_up(pl.cdiv(B, num_cores), _LANE)
            if per_core < B:      # splitting really produces >= 2 steps
                return per_core   # one 128-aligned step per TensorCore (v7x)
        return B                  # single step; no forced split on 1-TC parts
    steps = pl.cdiv(B, block_batch)
    steps = _round_up(steps, max(1, num_cores))   # keep the TCs balanced
    return _round_up(pl.cdiv(B, steps), _LANE)


def _mlp_kernel(x_ref,
                w1_ref, b1_ref,
                w2_ref, b2_ref,
                w3_ref, b3_ref,
                w4_ref, b4_ref,
                o_ref, *, compute_dtype):
    """Fused 4-layer MLP on one batch tile: (ReLU o Linear) x3 -> sigmoid(Linear)."""
    x = x_ref[...].astype(compute_dtype)

    # layer_1: (tb, D) @ (D, 512) -- MXU, f32 accumulate; bias/ReLU in f32.
    h = jnp.dot(x, w1_ref[...].astype(compute_dtype),
                preferred_element_type=jnp.float32) + b1_ref[...]
    h = jnp.maximum(h, 0.0)

    # layer_2: (tb, 512) @ (512, 128)   (~75% of the FLOPs)
    h = jnp.dot(h.astype(compute_dtype), w2_ref[...].astype(compute_dtype),
                preferred_element_type=jnp.float32) + b2_ref[...]
    h = jnp.maximum(h, 0.0)

    # layer_3: (tb, 128) @ (128, 32)
    h = jnp.dot(h.astype(compute_dtype), w3_ref[...].astype(compute_dtype),
                preferred_element_type=jnp.float32) + b3_ref[...]
    h3 = jnp.maximum(h, 0.0)

    # layer_out: contract w4 (1, 32) with h3 (tb, 32) on the last dim
    # (q @ k^T pattern) -> (1, tb).  The result is lane-dense, so the sigmoid
    # and the output store operate on dense vregs.  M=1, K=32: negligible MXU
    # cost; kept in f32 for accuracy.
    z = jax.lax.dot_general(
        w4_ref[...], h3,
        dimension_numbers=(((1,), (1,)), ((), ())),
        preferred_element_type=jnp.float32) + b4_ref[...]
    o_ref[...] = jax.nn.sigmoid(z).astype(o_ref.dtype)


@functools.partial(jax.jit,
                   static_argnames=("block_batch", "compute_dtype", "num_cores"))
def _forward_impl(x, params, *, block_batch, compute_dtype, num_cores):
    (w1, b1), (w2, b2), (w3, b3), (w4, b4) = params
    B, D = x.shape
    H1, H2, H3 = w1.shape[1], w2.shape[1], w3.shape[1]

    tb = _choose_batch_tile(B, block_batch, num_cores)
    grid = (pl.cdiv(B, tb),)

    # bf16 MXU path: only convert if the caller did not pre-cast (cast_params);
    # biases and the tiny output layer stay f32.
    if compute_dtype != jnp.float32:
        w1, w2, w3 = (w if w.dtype == compute_dtype else w.astype(compute_dtype)
                      for w in (w1, w2, w3))

    # Weights/biases are small and fully resident in VMEM; their block index is
    # constant so they are fetched once, not per grid step.
    full = lambda shape: pl.BlockSpec(shape, lambda i: (0,) * len(shape))
    kernel = functools.partial(_mlp_kernel, compute_dtype=compute_dtype)

    out_row = pl.pallas_call(
        kernel,
        out_shape=jax.ShapeDtypeStruct((1, B), jnp.float32),
        grid=grid,
        in_specs=[
            pl.BlockSpec((tb, D), lambda i: (i, 0)),   # x: tiled over batch
            full((D, H1)), full((1, H1)),
            full((H1, H2)), full((1, H2)),
            full((H2, H3)), full((1, H3)),
            full((1, H3)), full((1, 1)),               # w4 (1, 32), b4 (1, 1)
        ],
        out_specs=pl.BlockSpec((1, tb), lambda i: (0, i)),   # lane-dense row
        compiler_params=pltpu.CompilerParams(
            dimension_semantics=("parallel",)),
    )(x, w1, b1, w2, b2, w3, b3, w4, b4)

    return out_row.reshape(B, 1)   # back to PyTorch's (B, 1) output shape


def binary_classification_forward(x, params, *, block_batch=2048,
                                  compute_dtype=jnp.bfloat16, num_cores=None):
    """Runs the fused MLP kernel, tiling over the batch dimension."""
    if num_cores is None:
        num_cores = _detect_num_tensorcores()
    return _forward_impl(x, params, block_batch=int(block_batch),
                         compute_dtype=compute_dtype, num_cores=int(num_cores))


def init_params(key, input_dim):
    """Deterministic init mimicking nn.Linear's U(-1/sqrt(fan_in), 1/sqrt(fan_in)).

    Layers 1-3 are stored pre-transposed as (in_features, out_features) so the
    kernel computes x @ W + b on the MXU.  The output layer stays in PyTorch's
    native (1, 32) layout; the kernel contracts it against h3's last dim.
    """
    dims = [input_dim, 512, 128, 32]
    params = []
    for i in range(3):
        fan_in, fan_out = dims[i], dims[i + 1]
        key, kw, kb = jax.random.split(key, 3)
        bound = 1.0 / jnp.sqrt(fan_in)
        w = jax.random.uniform(kw, (fan_in, fan_out), jnp.float32, -bound, bound)
        b = jax.random.uniform(kb, (1, fan_out), jnp.float32, -bound, bound)
        params.append((w, b))
    key, kw, kb = jax.random.split(key, 3)
    bound = 1.0 / jnp.sqrt(32.0)
    w4 = jax.random.uniform(kw, (1, 32), jnp.float32, -bound, bound)
    b4 = jax.random.uniform(kb, (1, 1), jnp.float32, -bound, bound)
    params.append((w4, b4))
    return params


def cast_params(params, compute_dtype=jnp.bfloat16):
    """One-time weight cast for the bf16 MXU path (biases / output layer stay f32)."""
    (w1, b1), (w2, b2), (w3, b3), (w4, b4) = params
    return [(w1.astype(compute_dtype), b1),
            (w2.astype(compute_dtype), b2),
            (w3.astype(compute_dtype), b3),
            (w4, b4)]


def reference_forward(x, params):
    """Plain-JAX reference of the PyTorch forward pass."""
    (w1, b1), (w2, b2), (w3, b3), (w4, b4) = params
    h = jnp.maximum(x @ w1 + b1, 0.0)
    h = jnp.maximum(h @ w2 + b2, 0.0)
    h = jnp.maximum(h @ w3 + b3, 0.0)
    return jax.nn.sigmoid(h @ w4.T + b4)


if __name__ == "__main__":
    key = jax.random.PRNGKey(0)
    batch, input_dim = 64, 32   # small demo shapes

    key, kx = jax.random.split(key)
    x = jax.random.normal(kx, (batch, input_dim), jnp.float32)
    params = init_params(key, input_dim)

    ref = reference_forward(x, params)

    # f32 path: must track the plain-JAX reference tightly.
    out_f32 = jax.block_until_ready(
        binary_classification_forward(x, params, compute_dtype=jnp.float32))
    assert out_f32.shape == (batch, 1), out_f32.shape
    assert jnp.allclose(out_f32, ref, atol=1e-5, rtol=1e-5), (
        f"f32 max abs err = {jnp.max(jnp.abs(out_f32 - ref))}")

    # Default bf16 MXU path (recommended on v5e/v6e/v7x), weights pre-cast once.
    params_bf16 = cast_params(params, jnp.bfloat16)
    out_bf16 = jax.block_until_ready(
        binary_classification_forward(x, params_bf16))
    assert out_bf16.shape == (batch, 1), out_bf16.shape
    assert jnp.allclose(out_bf16, ref, atol=5e-2), (
        f"bf16 max abs err = {jnp.max(jnp.abs(out_bf16 - ref))}")

    print("KERNEL_OK")
</pallas_src>

<mosaic_0001>
module attributes {stable_mosaic.version = 11 : i64} {
  func.func @_mlp_kernel(%arg0: i32, %arg1: memref<64x32xf32, #tpu.memory_space<vmem>>, %arg2: memref<32x512xf32, #tpu.memory_space<vmem>>, %arg3: memref<1x512xf32, #tpu.memory_space<vmem>>, %arg4: memref<512x128xf32, #tpu.memory_space<vmem>>, %arg5: memref<1x128xf32, #tpu.memory_space<vmem>>, %arg6: memref<128x32xf32, #tpu.memory_space<vmem>>, %arg7: memref<1x32xf32, #tpu.memory_space<vmem>>, %arg8: memref<1x32xf32, #tpu.memory_space<vmem>>, %arg9: memref<1x1xf32, #tpu.memory_space<vmem>>, %arg10: memref<1x64xf32, #tpu.memory_space<vmem>>) attributes {dimension_semantics = [#tpu.dimension_semantics<parallel>], iteration_bounds = array<i64: 1>, scalar_prefetch = 0 : i64, scratch_operands = 0 : i64, tpu.core_type = #tpu.core_type<tc>, window_params = [{transform_indices = @transform_0, window_bounds = array<i64: 64, 32>}, {pipeline_mode = #tpu.pipeline_mode<synchronous>, transform_indices = @transform_1, window_bounds = array<i64: 32, 512>}, {pipeline_mode = #tpu.pipeline_mode<synchronous>, transform_indices = @transform_2, window_bounds = array<i64: 1, 512>}, {pipeline_mode = #tpu.pipeline_mode<synchronous>, transform_indices = @transform_3, window_bounds = array<i64: 512, 128>}, {pipeline_mode = #tpu.pipeline_mode<synchronous>, transform_indices = @transform_4, window_bounds = array<i64: 1, 128>}, {pipeline_mode = #tpu.pipeline_mode<synchronous>, transform_indices = @transform_5, window_bounds = array<i64: 128, 32>}, {pipeline_mode = #tpu.pipeline_mode<synchronous>, transform_indices = @transform_6, window_bounds = array<i64: 1, 32>}, {pipeline_mode = #tpu.pipeline_mode<synchronous>, transform_indices = @transform_7, window_bounds = array<i64: 1, 32>}, {pipeline_mode = #tpu.pipeline_mode<synchronous>, transform_indices = @transform_8, window_bounds = array<i64: 1, 1>}, {transform_indices = @transform_9, window_bounds = array<i64: 1, 64>}]} {
    %c0 = arith.constant 0 : index
    %c0_0 = arith.constant 0 : index
    %0 = vector.load %arg1[%c0, %c0_0] : memref<64x32xf32, #tpu.memory_space<vmem>>, vector<64x32xf32>
    %c0_1 = arith.constant 0 : index
    %c0_2 = arith.constant 0 : index
    %1 = vector.load %arg2[%c0_1, %c0_2] : memref<32x512xf32, #tpu.memory_space<vmem>>, vector<32x512xf32>
    %cst = arith.constant dense<0.000000e+00> : vector<64x512xf32>
    %2 = tpu.matmul %0, %1, %cst {dimension_numbers = #tpu.dot_dimension_numbers<[1], [0], [0], [1], [0, 0, 1, 1], [], []>} : vector<64x32xf32>, vector<32x512xf32>, vector<64x512xf32> -> vector<64x512xf32>
    %c0_3 = arith.constant 0 : index
    %c0_4 = arith.constant 0 : index
    %3 = vector.load %arg3[%c0_3, %c0_4] : memref<1x512xf32, #tpu.memory_space<vmem>>, vector<1x512xf32>
    %4 = vector.broadcast %3 : vector<1x512xf32> to vector<64x512xf32>
    %5 = arith.addf %2, %4 : vector<64x512xf32>
    %cst_5 = arith.constant 0.000000e+00 : f32
    %6 = vector.broadcast %cst_5 : f32 to vector<64x512xf32>
    %7 = arith.maximumf %5, %6 : vector<64x512xf32>
    %c0_6 = arith.constant 0 : index
    %c0_7 = arith.constant 0 : index
    %8 = vector.load %arg4[%c0_6, %c0_7] : memref<512x128xf32, #tpu.memory_space<vmem>>, vector<512x128xf32>
    %cst_8 = arith.constant dense<0.000000e+00> : vector<64x128xf32>
    %9 = tpu.matmul %7, %8, %cst_8 {dimension_numbers = #tpu.dot_dimension_numbers<[1], [0], [0], [1], [0, 0, 1, 1], [], []>} : vector<64x512xf32>, vector<512x128xf32>, vector<64x128xf32> -> vector<64x128xf32>
    %c0_9 = arith.constant 0 : index
    %c0_10 = arith.constant 0 : index
    %10 = vector.load %arg5[%c0_9, %c0_10] : memref<1x128xf32, #tpu.memory_space<vmem>>, vector<1x128xf32>
    %11 = vector.broadcast %10 : vector<1x128xf32> to vector<64x128xf32>
    %12 = arith.addf %9, %11 : vector<64x128xf32>
    %cst_11 = arith.constant 0.000000e+00 : f32
    %13 = vector.broadcast %cst_11 : f32 to vector<64x128xf32>
    %14 = arith.maximumf %12, %13 : vector<64x128xf32>
    %c0_12 = arith.constant 0 : index
    %c0_13 = arith.constant 0 : index
    %15 = vector.load %arg6[%c0_12, %c0_13] : memref<128x32xf32, #tpu.memory_space<vmem>>, vector<128x32xf32>
    %cst_14 = arith.constant dense<0.000000e+00> : vector<64x32xf32>
    %16 = tpu.matmul %14, %15, %cst_14 {dimension_numbers = #tpu.dot_dimension_numbers<[1], [0], [0], [1], [0, 0, 1, 1], [], []>} : vector<64x128xf32>, vector<128x32xf32>, vector<64x32xf32> -> vector<64x32xf32>
    %c0_15 = arith.constant 0 : index
    %c0_16 = arith.constant 0 : index
    %17 = vector.load %arg7[%c0_15, %c0_16] : memref<1x32xf32, #tpu.memory_space<vmem>>, vector<1x32xf32>
    %18 = vector.broadcast %17 : vector<1x32xf32> to vector<64x32xf32>
    %19 = arith.addf %16, %18 : vector<64x32xf32>
    %cst_17 = arith.constant 0.000000e+00 : f32
    %20 = vector.broadcast %cst_17 : f32 to vector<64x32xf32>
    %21 = arith.maximumf %19, %20 : vector<64x32xf32>
    %c0_18 = arith.constant 0 : index
    %c0_19 = arith.constant 0 : index
    %22 = vector.load %arg8[%c0_18, %c0_19] : memref<1x32xf32, #tpu.memory_space<vmem>>, vector<1x32xf32>
    %cst_20 = arith.constant dense<0.000000e+00> : vector<1x64xf32>
    %23 = tpu.matmul %22, %21, %cst_20 {dimension_numbers = #tpu.dot_dimension_numbers<[1], [1], [0], [0], [0, 0, 1, 0], [], []>} : vector<1x32xf32>, vector<64x32xf32>, vector<1x64xf32> -> vector<1x64xf32>
    %c0_21 = arith.constant 0 : index
    %c0_22 = arith.constant 0 : index
    %24 = vector.load %arg9[%c0_21, %c0_22] : memref<1x1xf32, #tpu.memory_space<vmem>>, vector<1x1xf32>
    %25 = vector.broadcast %24 : vector<1x1xf32> to vector<1x64xf32>
    %26 = arith.addf %23, %25 : vector<1x64xf32>
    %27 = arith.negf %26 : vector<1x64xf32>
    %28 = math.exp %27 : vector<1x64xf32>
    %cst_23 = arith.constant 1.000000e+00 : f32
    %29 = vector.broadcast %cst_23 : f32 to vector<1x64xf32>
    %30 = arith.addf %29, %28 : vector<1x64xf32>
    %31 = arith.divf %29, %30 : vector<1x64xf32>
    %c0_24 = arith.constant 0 : index
    %c0_25 = arith.constant 0 : index
    %32 = vector.load %arg10[%c0_24, %c0_25] : memref<1x64xf32, #tpu.memory_space<vmem>>, vector<1x64xf32>
    tpu.vector_store %arg10[%c0_24, %c0_25], %31 {strides = array<i32>} : memref<1x64xf32, #tpu.memory_space<vmem>>, vector<1x64xf32>,
    return
  }
  func.func @transform_0(%arg0: i32) -> (i32, i32) {
    %c0_i32 = arith.constant 0 : i32
    %c0_i32_0 = arith.constant 0 : i32
    return %arg0, %c0_i32 : i32, i32
  }
  func.func @transform_1(%arg0: i32) -> (i32, i32) {
    %c0_i32 = arith.constant 0 : i32
    %c0_i32_0 = arith.constant 0 : i32
    %c0_i32_1 = arith.constant 0 : i32
    return %c0_i32, %c0_i32_0 : i32, i32
  }
  func.func @transform_2(%arg0: i32) -> (i32, i32) {
    %c0_i32 = arith.constant 0 : i32
    %c0_i32_0 = arith.constant 0 : i32
    %c0_i32_1 = arith.constant 0 : i32
    return %c0_i32, %c0_i32_0 : i32, i32
  }
  func.func @transform_3(%arg0: i32) -> (i32, i32) {
    %c0_i32 = arith.constant 0 : i32
    %c0_i32_0 = arith.constant 0 : i32
    %c0_i32_1 = arith.constant 0 : i32
    return %c0_i32, %c0_i32_0 : i32, i32
  }
  func.func @transform_4(%arg0: i32) -> (i32, i32) {
    %c0_i32 = arith.constant 0 : i32
    %c0_i32_0 = arith.constant 0 : i32
    %c0_i32_1 = arith.constant 0 : i32
    return %c0_i32, %c0_i32_0 : i32, i32
  }
  func.func @transform_5(%arg0: i32) -> (i32, i32) {
    %c0_i32 = arith.constant 0 : i32
    %c0_i32_0 = arith.constant 0 : i32
    %c0_i32_1 = arith.constant 0 : i32
    return %c0_i32, %c0_i32_0 : i32, i32
  }
  func.func @transform_6(%arg0: i32) -> (i32, i32) {
    %c0_i32 = arith.constant 0 : i32
    %c0_i32_0 = arith.constant 0 : i32
    %c0_i32_1 = arith.constant 0 : i32
    return %c0_i32, %c0_i32_0 : i32, i32
  }
  func.func @transform_7(%arg0: i32) -> (i32, i32) {
    %c0_i32 = arith.constant 0 : i32
    %c0_i32_0 = arith.constant 0 : i32
    %c0_i32_1 = arith.constant 0 : i32
    return %c0_i32, %c0_i32_0 : i32, i32
  }
  func.func @transform_8(%arg0: i32) -> (i32, i32) {
    %c0_i32 = arith.constant 0 : i32
    %c0_i32_0 = arith.constant 0 : i32
    %c0_i32_1 = arith.constant 0 : i32
    return %c0_i32, %c0_i32_0 : i32, i32
  }
  func.func @transform_9(%arg0: i32) -> (i32, i32) {
    %c0_i32 = arith.constant 0 : i32
    %c0_i32_0 = arith.constant 0 : i32
    return %c0_i32, %arg0 : i32, i32
  }
}

</mosaic_0001>

<bundles_post_ra>
// kernel: _forward_impl.1
= control target key start
LH: loop header
LB: loop body
LE: loop exit
PB: predicated region body
PF: predicated region fallthrough
CT: control target
= control target key end

     0   :  { %s1684_s0 = inlined_call_operand.vmem [shape: f32[64,32], index: 0, kind: input, shape index: {}]   ;;  %s1685_s1 = inlined_call_operand.vmem [shape: f32[32,512], index: 1, kind: input, shape index: {}]   ;;  %s1686_s2 = inlined_call_operand.vmem [shape: f32[1,512], index: 2, kind: input, shape index: {}]   ;;  %s1687_s3 = inlined_call_operand.hbm [shape: f32[512,128], index: 3, kind: input, shape index: {}]   ;;  %s1688_s4 = inlined_call_operand.vmem [shape: f32[1,128], index: 4, kind: input, shape index: {}]   ;;  %s1689_s5 = inlined_call_operand.vmem [shape: f32[128,32], index: 5, kind: input, shape index: {}]   ;;  %s1690_s6 = inlined_call_operand.vmem [shape: f32[1,32], index: 6, kind: input, shape index: {}]   ;;  %s1691_s7 = inlined_call_operand.vmem [shape: f32[1,32], index: 7, kind: input, shape index: {}]   ;;  %s1692_s8 = inlined_call_operand.<no memory space> [shape: f32[1,1], index: 8, kind: input, shape index: {}]   ;;  %s1693_s9 = inlined_call_operand.hbm [shape: f32[1,64], index: 9, kind: output, shape index: {}]  }
   0x1   :  { %v14_v0 = vstv %s1692_s8 }
   0x2   :  { %15 = vst [vmem:[#allocation2] sm:$0x1] %v14_v0 }
   0x3   :  { %16 = vsyncpa [#allocation4], 0 }
   0x4   :  { %17 = vsyncpa [#allocation5], 0  ;;  %s1359_s11 = smov [#allocation3]   ;;  %s1311_s15 = scalar_lea.hbm %s1687_s3, 8192 }
   0x5   :  { %s29_s12 = sshll.u32 %s1359_s11, 4  ;;  %p1312_p0 = scmp.ne.s32.totalorder %s1687_s3, %s1311_s15  ;;  %s30_s12 = int_to_ptr.vmem [resolvable:$true] %s29_s12 }
   0x6   :  { %p1315_p1 = scmp.lt.u32.totalorder %s1311_s15, %s1687_s3 }
   0x8   :  { %p1317_p2 = pnand %p1315_p1, %p1312_p0 }
   0xa   :  { %1320 = shalt.err (!%p1317_p2)
}
   0xb   :  { %s1321_s8 = scalar_lea.vmem %s30_s12, 8192  ;;  %p1326_p4 = scmp.lt.s32.totalorder %s30_s12, %s30_s12 }
   0xc   :  { %p1322_p3 = scmp.ne.s32.totalorder %s30_s12, %s1321_s8  ;;  %p1327_p5 = scmp.lt.s32.totalorder %s1321_s8, %s1321_s8 }
   0xe   :  { %p1328_p6 = por %p1327_p5, %p1326_p4 }
  0x10   :  { %p1329_p7 = pnand %p1328_p6, %p1322_p3 }
  0x12   :  { %1332 = shalt.err (!%p1329_p7)
}
  0x13   :  { %s1360_s20 = smov 128   ;;  %s1361_s21 = smov 8  }
  0x14   :  { %35 = dma.hbm_to_vmem [thread:$0]  %s1687_s3, 8192, %s30_s12, [#allocation4], %s1360_s20, %s1360_s20, %s1361_s21  }
  0x15   :  { %1355 = dma.done.wait [#allocation4], 8192  }
  0x16   :  { %1356 = vsyncadd [#allocation4], 4294959104  ;;  %v1362_v1 = vmov 0.0   ;;  %v58_v2 = vld [vmem:[%s1685_s1 + $0x8] sm:$0xff]  ;;  %v60_v4 = vld [vmem:[%s1685_s1 + $0x18] sm:$0xff]  ;;  %vm95_vm0 = vcmask 261120  }
  0x17   :  { %184 = vmatprep.mubr.f32.mxu0 %v1362_v1  ;;  %297 = vmatprep.mubr.f32.mxu1 %v1362_v1  ;;  %v62_v3 = vld [vmem:[%s1685_s1 + $0x28] sm:$0xff]  ;;  %v64_v6 = vld [vmem:[%s1685_s1 + $0x38] sm:$0xff]  ;;  %v57_v7 = vld [vmem:[%s1685_s1] sm:$0xff]  ;;  %vm1364_vm1 = vmmov 0   ;;  %s1366_s12 = smov [#allocation6]   ;;  %vm917_vm3 = vcmask 516096  }
  0x18   :  { %v1170_v5 = vpack.c.bf16 %v62_v3, %v58_v2  ;;  %v61_v8 = vld [vmem:[%s1685_s1 + $0x20] sm:$0xff]  ;;  %v1178_v9 = vpack.c.bf16 %v64_v6, %v60_v4  ;;  %v59_v11 = vld [vmem:[%s1685_s1 + $0x10] sm:$0xff]  ;;  %v66_v13 = vld [vmem:[%s1685_s1 + $0x48] sm:$0xff]  ;;  %s925_s13 = sshll.u32 %s1366_s12, 4  ;;  %s926_s13 = int_to_ptr.vmem [resolvable:$true] %s925_s13 }
  0x19   :  { %v1172_v10 = vpack.c.bf16 %v61_v8, %v57_v7  ;;  %v63_v12 = vld [vmem:[%s1685_s1 + $0x30] sm:$0xff]  ;;  %v70_v15 = vld [vmem:[%s1685_s1 + $0x68] sm:$0xff]  ;;  %v68_v16 = vld [vmem:[%s1685_s1 + $0x58] sm:$0xff]  ;;  %s1337_s14 = scalar_lea.vmem %s926_s13, 32  ;;  %p1338_p9 = scmp.lt.s32.totalorder %s926_s13, %s926_s13 }
  0x1a   :  { %1171 = vmatprep.subr.bf16.mxu0 %v1170_v5  ;;  %v1180_v14 = vpack.c.bf16 %v63_v12, %v59_v11  ;;  %v72_v17 = vld [vmem:[%s1685_s1 + $0x78] sm:$0xff]  ;;  %1179 = vmatprep.subr.bf16.mxu1 %v1178_v9  ;;  %v1174_v18 = vpack.c.bf16 %v70_v15, %v66_v13  ;;  %v65_v20 = vld [vmem:[%s1685_s1 + $0x40] sm:$0xff]  ;;  %v67_v22 = vld [vmem:[%s1685_s1 + $0x50] sm:$0xff] }
  0x1b   :  { %1173 = vmatpush1.bf16.msra.mxu0 %v1172_v10  ;;  %v1182_v19 = vpack.c.bf16 %v72_v17, %v68_v16  ;;  %v69_v21 = vld [vmem:[%s1685_s1 + $0x60] sm:$0xff]  ;;  %v71_v24 = vld [vmem:[%s1685_s1 + $0x70] sm:$0xff]  ;;  %v50_v34 = vld [vmem:[%s1684_s0 + $0x8] sm:$0xff] }
  0x1c   :  { %1181 = vmatpush1.bf16.msra.mxu1 %v1180_v14  ;;  %v1176_v23 = vpack.c.bf16 %v69_v21, %v65_v20  ;;  %1175 = vmatprep.subr.bf16.mxu0 %v1174_v18  ;;  %v1184_v25 = vpack.c.bf16 %v71_v24, %v67_v22  ;;  %v49_v26 = vld [vmem:[%s1684_s0] sm:$0xff]  ;;  %v395_v28 = vld [vmem:[#allocation3 + $0x88] sm:$0xff]  ;;  %v396_v39 = vld [vmem:[#allocation3 + $0x90] sm:$0xff] }
  0x1d   :  { %1183 = vmatprep.subr.bf16.mxu1 %v1182_v19  ;;  %v394_v27 = vld [vmem:[#allocation3 + $0x80] sm:$0xff]  ;;  %v427_v31 = vld [vmem:[#allocation3 + $0x188] sm:$0xff]  ;;  %v397_v41 = vld [vmem:[#allocation3 + $0x98] sm:$0xff] }
  0x1e   :  { %v426_v29 = vld [vmem:[#allocation3 + $0x180] sm:$0xff]  ;;  %v1186_v30 = vpack.c.bf16 %v395_v28, %v394_v27  ;;  %v379_v33 = vld [vmem:[#allocation3 + $0x8] sm:$0xff]  ;;  %v428_v42 = vld [vmem:[#allocation3 + $0x190] sm:$0xff]  ;;  %v1190_v44 = vpack.c.bf16 %v397_v41, %v396_v39 }
  0x1f   :  { %1177 = vmatpush1.bf16.msra.mxu0 %v1176_v23  ;;  %v378_v32 = vld [vmem:[#allocation3] sm:$0xff]  ;;  %v1218_v35 = vpack.c.bf16 %v427_v31, %v426_v29  ;;  %v411_v38 = vld [vmem:[#allocation3 + $0x108] sm:$0xff]  ;;  %v429_v43 = vld [vmem:[#allocation3 + $0x198] sm:$0xff] }
  0x20   :  { %1185 = vmatpush1.bf16.msra.mxu1 %v1184_v25  ;;  %v1188_v36 = vpack.c.bf16 %v379_v33, %v378_v32  ;;  %v410_v37 = vld [vmem:[#allocation3 + $0x100] sm:$0xff]  ;;  %1187 = vmatprep.subr.bf16.mxu0 %v1186_v30  ;;  %v380_v45 = vld [vmem:[#allocation3 + $0x10] sm:$0xff]  ;;  %v381_v46 = vld [vmem:[#allocation3 + $0x18] sm:$0xff]  ;;  %v1222_v48 = vpack.c.bf16 %v429_v43, %v428_v42 }
  0x21   :  { %v1220_v40 = vpack.c.bf16 %v411_v38, %v410_v37  ;;  %v412_v47 = vld [vmem:[#allocation3 + $0x110] sm:$0xff]  ;;  %1219 = vmatprep.subr.bf16.mxu1 %v1218_v35  ;;  %v413_v49 = vld [vmem:[#allocation3 + $0x118] sm:$0xff]  ;;  %v398_v50 = vld [vmem:[#allocation3 + $0xa0] sm:$0xff]  ;;  %v1192_v52 = vpack.c.bf16 %v381_v46, %v380_v45 }
  0x22   :  { %934 = vmatmul.mubr.msk.f32.vlgmr.msra.gmra.mrb[0].mxu0 %vm95_vm0, %v49_v26  ;;  %v399_v51 = vld [vmem:[#allocation3 + $0xa8] sm:$0xff]  ;;  %v1224_v53 = vpack.c.bf16 %v413_v49, %v412_v47  ;;  %v430_v54 = vld [vmem:[#allocation3 + $0x1a0] sm:$0xff]  ;;  %v400_v62 = vld [vmem:[#allocation3 + $0xb0] sm:$0xff] }
  0x23   :  { %942 = vmatmul.mubr.msk.f32.vlgmr.msra.gmra.mrb[0].mxu1 %vm95_vm0, %v49_v26  ;;  %190 = vmatprep.mubr.f32.mxu0 %v1362_v1  ;;  %v431_v55 = vld [vmem:[#allocation3 + $0x1a8] sm:$0xff]  ;;  %v382_v56 = vld [vmem:[#allocation3 + $0x20] sm:$0xff]  ;;  %v1194_v57 = vpack.c.bf16 %v399_v51, %v398_v50  ;;  %v401_v63 = vld [vmem:[#allocation3 + $0xb8] sm:$0xff] }
  0x24   :  { %303 = vmatprep.mubr.f32.mxu1 %v1362_v1  ;;  %1189 = vmatpush3.bf16.msra.mxu0 %v1188_v36  ;;  %v383_v58 = vld [vmem:[#allocation3 + $0x28] sm:$0xff]  ;;  %v414_v59 = vld [vmem:[#allocation3 + $0x120] sm:$0xff]  ;;  %v1226_v0 = vpack.c.bf16 %v431_v55, %v430_v54  ;;  %v432_v4 = vld [vmem:[#allocation3 + $0x1b0] sm:$0xff]  ;;  %v1198_v7 = vpack.c.bf16 %v401_v63, %v400_v62 }
  0x25   :  { %1221 = vmatpush3.bf16.msra.mxu1 %v1220_v40  ;;  %1191 = vmatprep.subr.bf16.mxu0 %v1190_v44  ;;  %v415_v60 = vld [vmem:[#allocation3 + $0x128] sm:$0xff]  ;;  %v1196_v2 = vpack.c.bf16 %v383_v58, %v382_v56  ;;  %v433_v5 = vld [vmem:[#allocation3 + $0x1b8] sm:$0xff]  ;;  %v384_v6 = vld [vmem:[#allocation3 + $0x30] sm:$0xff] }
  0x26   :  { %935 = vmatmul.mubr.msk.f32.gmra.mrb[2].mxu0 %vm95_vm0, %v50_v34  ;;  %v51_v61 = vld [vmem:[%s1684_s0 + $0x10] sm:$0xff]  ;;  %1223 = vmatprep.subr.bf16.mxu1 %v1222_v48  ;;  %v1228_v3 = vpack.c.bf16 %v415_v60, %v414_v59  ;;  %v385_v8 = vld [vmem:[#allocation3 + $0x38] sm:$0xff]  ;;  %v402_v12 = vld [vmem:[#allocation3 + $0xc0] sm:$0xff]  ;;  %v1230_v14 = vpack.c.bf16 %v433_v5, %v432_v4 }
  0x27   :  { %943 = vmatmul.mubr.msk.f32.gmra.mrb[2].mxu1 %vm95_vm0, %v50_v34  ;;  %196 = vmatprep.mubr.f32.mxu0 %v1362_v1  ;;  %v416_v9 = vld [vmem:[#allocation3 + $0x130] sm:$0xff]  ;;  %v417_v10 = vld [vmem:[#allocation3 + $0x138] sm:$0xff]  ;;  %v403_v13 = vld [vmem:[#allocation3 + $0xc8] sm:$0xff]  ;;  %v1200_v15 = vpack.c.bf16 %v385_v8, %v384_v6 }
  0x28   :  { %309 = vmatprep.mubr.f32.mxu1 %v1362_v1  ;;  %1193 = vmatpush3.bf16.msra.mxu0 %v1192_v52  ;;  %v52_v11 = vld [vmem:[%s1684_s0 + $0x18] sm:$0xff]  ;;  %v1232_v16 = vpack.c.bf16 %v417_v10, %v416_v9  ;;  %v434_v17 = vld [vmem:[#allocation3 + $0x1c0] sm:$0xff]  ;;  %v435_v18 = vld [vmem:[#allocation3 + $0x1c8] sm:$0xff]  ;;  %v1202_v20 = vpack.c.bf16 %v403_v13, %v402_v12 }
  0x29   :  { %1225 = vmatpush3.bf16.msra.mxu1 %v1224_v53  ;;  %1195 = vmatprep.subr.bf16.mxu0 %v1194_v57  ;;  %v386_v19 = vld [vmem:[#allocation3 + $0x40] sm:$0xff]  ;;  %v387_v21 = vld [vmem:[#allocation3 + $0x48] sm:$0xff]  ;;  %v404_v25 = vld [vmem:[#allocation3 + $0xd0] sm:$0xff]  ;;  %v1234_v27 = vpack.c.bf16 %v435_v18, %v434_v17 }
  0x2a   :  { %936 = vmatmul.mubr.msk.f32.gmra.mrb[4].mxu0 %vm95_vm0, %v51_v61  ;;  %1227 = vmatprep.subr.bf16.mxu1 %v1226_v0  ;;  %v418_v22 = vld [vmem:[#allocation3 + $0x140] sm:$0xff]  ;;  %v419_v23 = vld [vmem:[#allocation3 + $0x148] sm:$0xff]  ;;  %v405_v26 = vld [vmem:[#allocation3 + $0xd8] sm:$0xff]  ;;  %v1204_v28 = vpack.c.bf16 %v387_v21, %v386_v19 }
  0x2b   :  { %944 = vmatmul.mubr.msk.f32.gmra.mrb[4].mxu1 %vm95_vm0, %v51_v61  ;;  %202 = vmatprep.mubr.f32.mxu0 %v1362_v1  ;;  %v53_v24 = vld [vmem:[%s1684_s0 + $0x20] sm:$0xff]  ;;  %v1236_v29 = vpack.c.bf16 %v419_v23, %v418_v22  ;;  %v436_v30 = vld [vmem:[#allocation3 + $0x1d0] sm:$0xff]  ;;  %v1206_v33 = vpack.c.bf16 %v405_v26, %v404_v25  ;;  %v54_v37 = vld [vmem:[%s1684_s0 + $0x28] sm:$0xff] }
  0x2c   :  { %315 = vmatprep.mubr.f32.mxu1 %v1362_v1  ;;  %1197 = vmatpush3.bf16.msra.mxu0 %v1196_v2  ;;  %v437_v31 = vld [vmem:[#allocation3 + $0x1d8] sm:$0xff]  ;;  %v388_v32 = vld [vmem:[#allocation3 + $0x50] sm:$0xff]  ;;  %v406_v38 = vld [vmem:[#allocation3 + $0xe0] sm:$0xff] }
  0x2d   :  { %1229 = vmatpush3.bf16.msra.mxu1 %v1228_v3  ;;  %1199 = vmatprep.subr.bf16.mxu0 %v1198_v7  ;;  %v389_v34 = vld [vmem:[#allocation3 + $0x58] sm:$0xff]  ;;  %v420_v35 = vld [vmem:[#allocation3 + $0x150] sm:$0xff]  ;;  %v407_v39 = vld [vmem:[#allocation3 + $0xe8] sm:$0xff]  ;;  %v1238_v40 = vpack.c.bf16 %v437_v31, %v436_v30  ;;  %v75_v7 = vlaneseq }
  0x2e   :  { %937 = vmatmul.mubr.msk.f32.gmra.mrb[6].mxu0 %vm95_vm0, %v52_v11  ;;  %1231 = vmatprep.subr.bf16.mxu1 %v1230_v14  ;;  %v421_v36 = vld [vmem:[#allocation3 + $0x158] sm:$0xff]  ;;  %v1208_v41 = vpack.c.bf16 %v389_v34, %v388_v32  ;;  %v438_v43 = vld [vmem:[#allocation3 + $0x1e0] sm:$0xff]  ;;  %v439_v44 = vld [vmem:[#allocation3 + $0x1e8] sm:$0xff]  ;;  %v1210_v45 = vpack.c.bf16 %v407_v39, %v406_v38 }
  0x2f   :  { %945 = vmatmul.mubr.msk.f32.gmra.mrb[6].mxu1 %vm95_vm0, %v52_v11  ;;  %208 = vmatprep.mubr.f32.mxu0 %v1362_v1  ;;  %v1240_v42 = vpack.c.bf16 %v421_v36, %v420_v35  ;;  %v55_v46 = vld [vmem:[%s1684_s0 + $0x30] sm:$0xff]  ;;  %v1242_v47 = vpack.c.bf16 %v439_v44, %v438_v43  ;;  %v56_v48 = vld [vmem:[%s1684_s0 + $0x38] sm:$0xff]  ;;  %v390_v49 = vld [vmem:[#allocation3 + $0x60] sm:$0xff]  ;;  %v1542_v8 = vshrl.u32 %v75_v7, 7 }
  0x30   :  { %321 = vmatprep.mubr.f32.mxu1 %v1362_v1  ;;  %1201 = vmatpush3.bf16.msra.mxu0 %v1200_v15  ;;  %v391_v50 = vld [vmem:[#allocation3 + $0x68] sm:$0xff]  ;;  %v422_v51 = vld [vmem:[#allocation3 + $0x160] sm:$0xff]  ;;  %v408_v55 = vld [vmem:[#allocation3 + $0xf0] sm:$0xff] }
  0x31   :  { %1233 = vmatpush3.bf16.msra.mxu1 %v1232_v16  ;;  %1203 = vmatprep.subr.bf16.mxu0 %v1202_v20  ;;  %v1212_v52 = vpack.c.bf16 %v391_v50, %v390_v49  ;;  %v423_v53 = vld [vmem:[#allocation3 + $0x168] sm:$0xff]  ;;  %v409_v56 = vld [vmem:[#allocation3 + $0xf8] sm:$0xff]  ;;  %v440_v57 = vld [vmem:[#allocation3 + $0x1f0] sm:$0xff]  ;;  %v77_v9 = vsub.s32 0, %v1542_v8  ;;  %v85_v11 = vsub.s32 2, %v1542_v8  ;;  %v81_v12 = vsub.s32 1, %v1542_v8 }
  0x32   :  { %938 = vmatmul.mubr.msk.f32.gmra.mrb[8].mxu0 %vm95_vm0, %v53_v24  ;;  %1235 = vmatprep.subr.bf16.mxu1 %v1234_v27  ;;  %v1244_v54 = vpack.c.bf16 %v423_v53, %v422_v51  ;;  %v1214_v58 = vpack.c.bf16 %v409_v56, %v408_v55  ;;  %v441_v59 = vld [vmem:[#allocation3 + $0x1f8] sm:$0xff]  ;;  %v392_v60 = vld [vmem:[#allocation3 + $0x70] sm:$0xff]  ;;  %v668_v5 = vld [vmem:[%s1689_s5 + $0x8] sm:$0xff]  ;;  %v89_v13 = vsub.s32 3, %v1542_v8 }
  0x33   :  { %946 = vmatmul.mubr.msk.f32.gmra.mrb[8].mxu1 %vm95_vm0, %v53_v24  ;;  %214 = vmatprep.mubr.f32.mxu0 %v1362_v1  ;;  %v393_v61 = vld [vmem:[#allocation3 + $0x78] sm:$0xff]  ;;  %v1246_v62 = vpack.c.bf16 %v441_v59, %v440_v57  ;;  %v424_v0 = vld [vmem:[#allocation3 + $0x170] sm:$0xff]  ;;  %vm1654_vm2 = vmpackc.low %vm95_vm0, %vm95_vm0 }
  0x34   :  { %327 = vmatprep.mubr.f32.mxu1 %v1362_v1  ;;  %1205 = vmatpush3.bf16.msra.mxu0 %v1204_v28  ;;  %v1216_v63 = vpack.c.bf16 %v393_v61, %v392_v60  ;;  %v425_v2 = vld [vmem:[#allocation3 + $0x178] sm:$0xff]  ;;  %v669_v25 = vld [vmem:[%s1689_s5 + $0x10] sm:$0xff] }
  0x35   :  { %1237 = vmatpush3.bf16.msra.mxu1 %v1236_v29  ;;  %1207 = vmatprep.subr.bf16.mxu0 %v1206_v33  ;;  %v1248_v3 = vpack.c.bf16 %v425_v2, %v424_v0  ;;  %v667_v4 = vld [vmem:[%s1689_s5] sm:$0xff]  ;;  %v670_v26 = vld [vmem:[%s1689_s5 + $0x18] sm:$0xff]  ;;  %v673_v55 = vld [vmem:[%s1689_s5 + $0x30] sm:$0xff] }
  0x36   :  { %939 = vmatmul.mubr.msk.f32.gmra.mrb[10].mxu0 %vm95_vm0, %v54_v37  ;;  %1239 = vmatprep.subr.bf16.mxu1 %v1238_v40  ;;  %v1250_v6 = vpack.c.bf16 %v668_v5, %v667_v4  ;;  %v73_v10 = vld [vmem:[%s1686_s2] sm:$0xf]  ;;  %v1254_v36 = vpack.c.bf16 %v670_v26, %v669_v25  ;;  %v674_v56 = vld [vmem:[%s1689_s5 + $0x38] sm:$0xff] }
  0x37   :  { %947 = vmatmul.mubr.msk.f32.gmra.mrb[10].mxu1 %vm95_vm0, %v54_v37  ;;  %220 = vmatprep.mubr.f32.mxu0 %v1362_v1  ;;  %v1553_v14 = vrot.slane %v73_v10, %v77_v9  ;;  %v1555_v15 = vrot.slane %v73_v10, %v85_v11  ;;  %v1557_v16 = vrot.slane %v73_v10, %v81_v12  ;;  %v671_v40 = vld [vmem:[%s1689_s5 + $0x20] sm:$0xff] }
  0x38   :  { %333 = vmatprep.mubr.f32.mxu1 %v1362_v1  ;;  %1209 = vmatpush3.bf16.msra.mxu0 %v1208_v41  ;;  %v1559_v17 = vrot.slane %v73_v10, %v89_v13  ;;  %v672_v41 = vld [vmem:[%s1689_s5 + $0x28] sm:$0xff]  ;;  %v675_v7 = vld [vmem:[%s1689_s5 + $0x40] sm:$0xff] }
  0x39   :  { %1241 = vmatpush3.bf16.msra.mxu1 %v1240_v42  ;;  %1211 = vmatprep.subr.bf16.mxu0 %v1210_v45  ;;  %v1258_v51 = vpack.c.bf16 %v672_v41, %v671_v40  ;;  %v676_v10 = vld [vmem:[%s1689_s5 + $0x48] sm:$0xff] }
  0x3a   :  { %940 = vmatmul.mubr.msk.f32.gmra.mrb[12].mxu0 %vm95_vm0, %v55_v46  ;;  %1243 = vmatprep.subr.bf16.mxu1 %v1242_v47 }
  0x3b   :  { %948 = vmatmul.mubr.msk.f32.gmra.mrb[12].mxu1 %vm95_vm0, %v55_v46  ;;  %226 = vmatprep.mubr.f32.mxu0 %v1362_v1 }
  0x3c   :  { %339 = vmatprep.mubr.f32.mxu1 %v1362_v1  ;;  %1213 = vmatpush3.bf16.msra.mxu0 %v1212_v52 }
  0x3d   :  { %1245 = vmatpush3.bf16.msra.mxu1 %v1244_v54  ;;  %1215 = vmatprep.subr.bf16.mxu0 %v1214_v58 }
  0x3e   :  { %941 = vmatmul.mubr.msk.f32.gmra.mrb[14].mxu0 %vm95_vm0, %v56_v48  ;;  %1247 = vmatprep.subr.bf16.mxu1 %v1246_v62 }
  0x3f   :  { %949 = vmatmul.mubr.msk.f32.gmra.mrb[14].mxu1 %vm95_vm0, %v56_v48 }
  0x40   :  { %1217 = vmatpush3.bf16.msra.mxu0 %v1216_v63 }
  0x41   :  { %1249 = vmatpush3.bf16.msra.mxu1 %v1248_v3  ;;  %1251 = vmatprep.subr.bf16.mxu0 %v1250_v6  ;;  %v1262_v3 = vpack.c.bf16 %v674_v56, %v673_v55 }
  0xf5   :  { %v186_v18 = vpop.f32.mrb[0].mxu0 }
  0xf6   :  { %v187_v19 = vadd.f32 %v186_v18, %v1553_v14  ;;  %v299_v20 = vpop.f32.mrb[0].mxu1  ;;  %v188_v21 = vpop.f32.mrb[1].mxu0 }
  0xf7   :  { %v300_v22 = vadd.f32 %v299_v20, %v1555_v15  ;;  %v189_v23 = vadd.f32 %v188_v21, %v1557_v16  ;;  %v301_v24 = vpop.f32.mrb[1].mxu1 }
  0xf8   :  { %v302_v27 = vadd.f32 %v301_v24, %v1559_v17  ;;  %v346_v31 = vmax.f32 %v187_v19, 0.0  ;;  %v1266_v24 = vpack.c.bf16 %v676_v10, %v675_v7  ;;  %v681_v10 = vld [vmem:[%s1689_s5 + $0x70] sm:$0xff] }
  0xf9   :  { %v348_v28 = vmax.f32 %v300_v22, 0.0  ;;  %v347_v29 = vmax.f32 %v189_v23, 0.0  ;;  %v192_v30 = vpop.f32.mrb[2].mxu0 }
  0xfa   :  { %v349_v32 = vmax.f32 %v302_v27, 0.0  ;;  %v193_v33 = vadd.f32 %v192_v30, %v1553_v14  ;;  %v305_v34 = vpop.f32.mrb[2].mxu1  ;;  %v194_v35 = vpop.f32.mrb[3].mxu0 }
  0xfb   :  { %v306_v37 = vadd.f32 %v305_v34, %v1555_v15  ;;  %v195_v38 = vadd.f32 %v194_v35, %v1557_v16  ;;  %v307_v39 = vpop.f32.mrb[3].mxu1  ;;  %513 = vmatprep.mubr.f32.mxu0 %v347_v29 }
  0xfc   :  { %v308_v42 = vadd.f32 %v307_v39, %v1559_v17  ;;  %618 = vmatprep.mubr.f32.mxu1 %v349_v32  ;;  %514 = vmatmul.mubr.f32.vlgmr.msra.gmra.mrb[16].mxu0 %v346_v31  ;;  %v350_v46 = vmax.f32 %v193_v33, 0.0 }
  0xfd   :  { %v352_v43 = vmax.f32 %v306_v37, 0.0  ;;  %v351_v44 = vmax.f32 %v195_v38, 0.0  ;;  %619 = vmatmul.mubr.f32.vlgmr.msra.gmra.mrb[16].mxu1 %v348_v28  ;;  %v198_v45 = vpop.f32.mrb[4].mxu0  ;;  %1253 = vmatpush3.bf16.msra.mxu0 %v1250_v6 }
  0xfe   :  { %v353_v47 = vmax.f32 %v308_v42, 0.0  ;;  %v199_v48 = vadd.f32 %v198_v45, %v1553_v14  ;;  %v311_v49 = vpop.f32.mrb[4].mxu1  ;;  %v200_v50 = vpop.f32.mrb[5].mxu0  ;;  %1255 = vmatprep.subr.bf16.mxu0 %v1254_v36 }
  0xff   :  { %v312_v52 = vadd.f32 %v311_v49, %v1555_v15  ;;  %v201_v53 = vadd.f32 %v200_v50, %v1557_v16  ;;  %v313_v54 = vpop.f32.mrb[5].mxu1  ;;  %518 = vmatprep.mubr.f32.mxu0 %v351_v44 }
 0x100   :  { %v314_v57 = vadd.f32 %v313_v54, %v1559_v17  ;;  %623 = vmatprep.mubr.f32.mxu1 %v353_v47  ;;  %519 = vmatmul.mubr.f32.gmra.mrb[18].mxu0 %v350_v46  ;;  %v354_v61 = vmax.f32 %v199_v48, 0.0 }
 0x101   :  { %v356_v58 = vmax.f32 %v312_v52, 0.0  ;;  %v355_v59 = vmax.f32 %v201_v53, 0.0  ;;  %624 = vmatmul.mubr.f32.gmra.mrb[18].mxu1 %v352_v43  ;;  %v204_v60 = vpop.f32.mrb[6].mxu0  ;;  %1257 = vmatpush3.bf16.msra.mxu0 %v1254_v36 }
 0x102   :  { %v357_v62 = vmax.f32 %v314_v57, 0.0  ;;  %v205_v63 = vadd.f32 %v204_v60, %v1553_v14  ;;  %v317_v0 = vpop.f32.mrb[6].mxu1  ;;  %v206_v2 = vpop.f32.mrb[7].mxu0  ;;  %1259 = vmatprep.subr.bf16.mxu0 %v1258_v51 }
 0x103   :  { %v318_v4 = vadd.f32 %v317_v0, %v1555_v15  ;;  %v207_v5 = vadd.f32 %v206_v2, %v1557_v16  ;;  %v319_v6 = vpop.f32.mrb[7].mxu1  ;;  %523 = vmatprep.mubr.f32.mxu0 %v355_v59 }
 0x104   :  { %v320_v11 = vadd.f32 %v319_v6, %v1559_v17  ;;  %628 = vmatprep.mubr.f32.mxu1 %v357_v62  ;;  %524 = vmatmul.mubr.f32.gmra.mrb[20].mxu0 %v354_v61  ;;  %v358_v19 = vmax.f32 %v205_v63, 0.0  ;;  %v680_v6 = vld [vmem:[%s1689_s5 + $0x68] sm:$0xff] }
 0x105   :  { %v360_v12 = vmax.f32 %v318_v4, 0.0  ;;  %v359_v13 = vmax.f32 %v207_v5, 0.0  ;;  %629 = vmatmul.mubr.f32.gmra.mrb[20].mxu1 %v356_v58  ;;  %v210_v18 = vpop.f32.mrb[8].mxu0  ;;  %1261 = vmatpush3.bf16.msra.mxu0 %v1258_v51 }
 0x106   :  { %v361_v20 = vmax.f32 %v320_v11, 0.0  ;;  %v211_v21 = vadd.f32 %v210_v18, %v1553_v14  ;;  %v323_v22 = vpop.f32.mrb[8].mxu1  ;;  %v212_v23 = vpop.f32.mrb[9].mxu0  ;;  %1263 = vmatprep.subr.bf16.mxu0 %v1262_v3  ;;  %v682_v11 = vld [vmem:[%s1689_s5 + $0x78] sm:$0xff] }
 0x107   :  { %v324_v25 = vadd.f32 %v323_v22, %v1555_v15  ;;  %v213_v26 = vadd.f32 %v212_v23, %v1557_v16  ;;  %v325_v27 = vpop.f32.mrb[9].mxu1  ;;  %528 = vmatprep.mubr.f32.mxu0 %v359_v13 }
 0x108   :  { %v326_v28 = vadd.f32 %v325_v27, %v1559_v17  ;;  %633 = vmatprep.mubr.f32.mxu1 %v361_v20  ;;  %529 = vmatmul.mubr.f32.gmra.mrb[22].mxu0 %v358_v19  ;;  %v362_v32 = vmax.f32 %v211_v21, 0.0  ;;  %v1638_v19 = vld [vmem:[%s1688_s4] ss:$0 sm:$0xff] }
 0x109   :  { %v364_v29 = vmax.f32 %v324_v25, 0.0  ;;  %v363_v30 = vmax.f32 %v213_v26, 0.0  ;;  %634 = vmatmul.mubr.f32.gmra.mrb[22].mxu1 %v360_v12  ;;  %v216_v31 = vpop.f32.mrb[10].mxu0  ;;  %1265 = vmatpush3.bf16.msra.mxu0 %v1262_v3  ;;  %v1278_v12 = vpack.c.bf16 %v682_v11, %v681_v10 }
 0x10a   :  { %v365_v33 = vmax.f32 %v326_v28, 0.0  ;;  %v217_v34 = vadd.f32 %v216_v31, %v1553_v14  ;;  %v329_v35 = vpop.f32.mrb[10].mxu1  ;;  %v218_v36 = vpop.f32.mrb[11].mxu0  ;;  %1267 = vmatprep.subr.bf16.mxu0 %v1266_v24 }
 0x10b   :  { %v330_v37 = vadd.f32 %v329_v35, %v1555_v15  ;;  %v219_v38 = vadd.f32 %v218_v36, %v1557_v16  ;;  %v331_v39 = vpop.f32.mrb[11].mxu1  ;;  %533 = vmatprep.mubr.f32.mxu0 %v363_v30 }
 0x10c   :  { %v332_v40 = vadd.f32 %v331_v39, %v1559_v17  ;;  %638 = vmatprep.mubr.f32.mxu1 %v365_v33  ;;  %534 = vmatmul.mubr.f32.gmra.mrb[24].mxu0 %v362_v32  ;;  %v366_v44 = vmax.f32 %v217_v34, 0.0 }
 0x10d   :  { %v368_v41 = vmax.f32 %v330_v37, 0.0  ;;  %v367_v42 = vmax.f32 %v219_v38, 0.0  ;;  %639 = vmatmul.mubr.f32.gmra.mrb[24].mxu1 %v364_v29  ;;  %v222_v43 = vpop.f32.mrb[12].mxu0  ;;  %1269 = vmatpush3.bf16.msra.mxu0 %v1266_v24 }
 0x10e   :  { %v369_v45 = vmax.f32 %v332_v40, 0.0  ;;  %v223_v46 = vadd.f32 %v222_v43, %v1553_v14  ;;  %v335_v47 = vpop.f32.mrb[12].mxu1  ;;  %v224_v48 = vpop.f32.mrb[13].mxu0 }
 0x10f   :  { %v336_v49 = vadd.f32 %v335_v47, %v1555_v15  ;;  %v225_v50 = vadd.f32 %v224_v48, %v1557_v16  ;;  %v337_v51 = vpop.f32.mrb[13].mxu1  ;;  %538 = vmatprep.mubr.f32.mxu0 %v367_v42 }
 0x110   :  { %v338_v52 = vadd.f32 %v337_v51, %v1559_v17  ;;  %643 = vmatprep.mubr.f32.mxu1 %v369_v45  ;;  %539 = vmatmul.mubr.f32.gmra.mrb[26].mxu0 %v366_v44  ;;  %v370_v56 = vmax.f32 %v223_v46, 0.0 }
 0x111   :  { %v372_v53 = vmax.f32 %v336_v49, 0.0  ;;  %v371_v54 = vmax.f32 %v225_v50, 0.0  ;;  %644 = vmatmul.mubr.f32.gmra.mrb[26].mxu1 %v368_v41  ;;  %v228_v55 = vpop.f32.mrb[14].mxu0 }
 0x112   :  { %v373_v57 = vmax.f32 %v338_v52, 0.0  ;;  %v229_v58 = vadd.f32 %v228_v55, %v1553_v14  ;;  %v341_v59 = vpop.f32.mrb[14].mxu1  ;;  %v230_v60 = vpop.f32.mrb[15].mxu0  ;;  %v677_v14 = vld [vmem:[%s1689_s5 + $0x50] sm:$0xff] }
 0x113   :  { %v342_v61 = vadd.f32 %v341_v59, %v1555_v15  ;;  %v231_v62 = vadd.f32 %v230_v60, %v1557_v16  ;;  %v343_v63 = vpop.f32.mrb[15].mxu1  ;;  %543 = vmatprep.mubr.f32.mxu0 %v371_v54  ;;  %v678_v15 = vld [vmem:[%s1689_s5 + $0x58] sm:$0xff] }
 0x114   :  { %v344_v0 = vadd.f32 %v343_v63, %v1559_v17  ;;  %648 = vmatprep.mubr.f32.mxu1 %v373_v57  ;;  %544 = vmatmul.mubr.f32.gmra.mrb[28].mxu0 %v370_v56  ;;  %v374_v4 = vmax.f32 %v229_v58, 0.0  ;;  %v1270_v16 = vpack.c.bf16 %v678_v15, %v677_v14  ;;  %v679_v17 = vld [vmem:[%s1689_s5 + $0x60] sm:$0xff] }
 0x115   :  { %v376_v2 = vmax.f32 %v342_v61, 0.0  ;;  %v375_v3 = vmax.f32 %v231_v62, 0.0  ;;  %649 = vmatmul.mubr.f32.gmra.mrb[28].mxu1 %v372_v53  ;;  %v1274_v7 = vpack.c.bf16 %v680_v6, %v679_v17 }
 0x116   :  { %v377_v5 = vmax.f32 %v344_v0, 0.0  ;;  %1271 = vmatprep.subr.bf16.mxu0 %v1270_v16 }
 0x117   :  { %548 = vmatprep.mubr.f32.mxu0 %v375_v3  ;;  %1273 = vmatpush3.bf16.msra.mxu0 %v1270_v16 }
 0x118   :  { %653 = vmatprep.mubr.f32.mxu1 %v377_v5  ;;  %549 = vmatmul.mubr.f32.gmra.mrb[30].mxu0 %v374_v4 }
 0x119   :  { %654 = vmatmul.mubr.f32.gmra.mrb[30].mxu1 %v376_v2  ;;  %1275 = vmatprep.subr.bf16.mxu0 %v1274_v7 }
 0x11a   :  { %1167 = vmatprep.mubr.msk.f32.mxu1 %vm1364_vm1, %v1362_v1 }
 0x11b   :  { %1277 = vmatpush3.bf16.msra.mxu0 %v1274_v7 }
 0x11c   :  { %1279 = vmatprep.subr.bf16.mxu0 %v1278_v12 }
 0x11f   :  { %1281 = vmatpush3.bf16.msra.mxu0 %v1278_v12 }
 0x1cf   :  { %v994_v13 = vpop.f32.mrb[16].mxu0 }
 0x1d0   :  { %v1050_v18 = vpop.f32.mrb[16].mxu1  ;;  %v995_v20 = vpop.f32.mrb[17].mxu0 }
 0x1d1   :  { %v996_v21 = vadd.f32 %v995_v20, %v994_v13  ;;  %v1051_v22 = vpop.f32.mrb[17].mxu1 }
 0x1d2   :  { %v1052_v23 = vadd.f32 %v1051_v22, %v1050_v18 }
 0x1d3   :  { %v516_v24 = vadd.f32 %v996_v21, %v1638_v19  ;;  %v997_v25 = vpop.f32.mrb[18].mxu0 }
 0x1d4   :  { %v1053_v26 = vpop.f32.mrb[18].mxu1  ;;  %v998_v27 = vpop.f32.mrb[19].mxu0 }
 0x1d5   :  { %v621_v28 = vadd.f32 %v1052_v23, %v516_v24  ;;  %v999_v29 = vadd.f32 %v998_v27, %v997_v25  ;;  %v1054_v30 = vpop.f32.mrb[19].mxu1 }
 0x1d6   :  { %v1055_v31 = vadd.f32 %v1054_v30, %v1053_v26  ;;  %v1363_v30 = vmov 0.0|0.0  }
 0x1d7   :  { %v659_v32 = vmax.f32 %v621_v28, 0.0  ;;  %v521_v33 = vadd.f32 %v999_v29, %v1638_v19  ;;  %v1000_v34 = vpop.f32.mrb[20].mxu0  ;;  %1282 = vmatprep.subr.bf16.mxu1 %v1363_v30 }
 0x1d8   :  { %v1056_v35 = vpop.f32.mrb[20].mxu1  ;;  %v1001_v36 = vpop.f32.mrb[21].mxu0 }
 0x1d9   :  { %v626_v37 = vadd.f32 %v1055_v31, %v521_v33  ;;  %v1002_v38 = vadd.f32 %v1001_v36, %v1000_v34  ;;  %v1057_v39 = vpop.f32.mrb[21].mxu1  ;;  %1139 = vmatprep.mubr.f32.mxu0 %v659_v32  ;;  %v804_v31 = vld [vmem:[#allocation2] sm:$0x1]  ;;  %v1365_v32 = vmov 0  }
 0x1da   :  { %v1058_v40 = vadd.f32 %v1057_v39, %v1056_v35  ;;  %1306 = vset.pattern.permute.xlu0 %v1365_v32  ;;  %v951_v33 = vld [vmem:[%s1690_s6] ss:$0 sm:$0xff] }
 0x1db   :  { %v660_v41 = vmax.f32 %v626_v37, 0.0  ;;  %v526_v42 = vadd.f32 %v1002_v38, %v1638_v19  ;;  %v1003_v43 = vpop.f32.mrb[22].mxu0  ;;  %807 = vperm.xlu0 %1306, %v804_v31  }
 0x1dc   :  { %v1059_v44 = vpop.f32.mrb[22].mxu1  ;;  %v1004_v45 = vpop.f32.mrb[23].mxu0 }
 0x1dd   :  { %v631_v46 = vadd.f32 %v1058_v40, %v526_v42  ;;  %v1005_v47 = vadd.f32 %v1004_v45, %v1003_v43  ;;  %v1060_v48 = vpop.f32.mrb[23].mxu1  ;;  %1140 = vmatmul.mubr.f32.vlgmr.msra.gmra.mrb[32].mxu0 %v660_v41 }
 0x1de   :  { %v1061_v49 = vadd.f32 %v1060_v48, %v1059_v44 }
 0x1df   :  { %v661_v50 = vmax.f32 %v631_v46, 0.0  ;;  %v531_v51 = vadd.f32 %v1005_v47, %v1638_v19  ;;  %v1006_v52 = vpop.f32.mrb[24].mxu0 }
 0x1e0   :  { %v1062_v53 = vpop.f32.mrb[24].mxu1  ;;  %v1007_v54 = vpop.f32.mrb[25].mxu0 }
 0x1e1   :  { %v636_v55 = vadd.f32 %v1061_v49, %v531_v51  ;;  %v1008_v56 = vadd.f32 %v1007_v54, %v1006_v52  ;;  %v1063_v57 = vpop.f32.mrb[25].mxu1  ;;  %1142 = vmatprep.mubr.f32.mxu0 %v661_v50 }
 0x1e2   :  { %v1064_v58 = vadd.f32 %v1063_v57, %v1062_v53 }
 0x1e3   :  { %v662_v59 = vmax.f32 %v636_v55, 0.0  ;;  %v536_v60 = vadd.f32 %v1008_v56, %v1638_v19  ;;  %v1009_v61 = vpop.f32.mrb[26].mxu0 }
 0x1e4   :  { %v1065_v62 = vpop.f32.mrb[26].mxu1  ;;  %v1010_v63 = vpop.f32.mrb[27].mxu0 }
 0x1e5   :  { %v641_v0 = vadd.f32 %v1064_v58, %v536_v60  ;;  %v1011_v2 = vadd.f32 %v1010_v63, %v1009_v61  ;;  %v1066_v3 = vpop.f32.mrb[27].mxu1  ;;  %1143 = vmatmul.mubr.f32.gmra.mrb[34].mxu0 %v662_v59  ;;  %v803_v61 = vld [vmem:[%s1691_s7] sm:$0x1]  ;;  %s1333_s7 = scalar_lea.vmem %s926_s13, 16 }
 0x1e6   :  { %v1067_v4 = vadd.f32 %v1066_v3, %v1065_v62  ;;  %p1334_p8 = scmp.ne.s32.totalorder %s926_s13, %s1333_s7  ;;  %p1339_p10 = scmp.lt.s32.totalorder %s1337_s14, %s1333_s7 }
 0x1e7   :  { %v663_v5 = vmax.f32 %v641_v0, 0.0  ;;  %v541_v14 = vadd.f32 %v1011_v2, %v1638_v19  ;;  %v1012_v15 = vpop.f32.mrb[28].mxu0 }
 0x1e8   :  { %v1068_v16 = vpop.f32.mrb[28].mxu1  ;;  %v1013_v17 = vpop.f32.mrb[29].mxu0  ;;  %p1340_p11 = por %p1339_p10, %p1338_p9 }
 0x1e9   :  { %v646_v6 = vadd.f32 %v1067_v4, %v541_v14  ;;  %v1014_v7 = vadd.f32 %v1013_v17, %v1012_v15  ;;  %v1069_v10 = vpop.f32.mrb[29].mxu1  ;;  %1145 = vmatprep.mubr.f32.mxu0 %v663_v5 }
 0x1ea   :  { %v1070_v11 = vadd.f32 %v1069_v10, %v1068_v16  ;;  %p1341_p12 = pnand %p1340_p11, %p1334_p8 }
 0x1eb   :  { %v664_v12 = vmax.f32 %v646_v6, 0.0  ;;  %v546_v13 = vadd.f32 %v1014_v7, %v1638_v19  ;;  %v1015_v18 = vpop.f32.mrb[30].mxu0 }
 0x1ec   :  { %v1071_v20 = vpop.f32.mrb[30].mxu1  ;;  %v1016_v21 = vpop.f32.mrb[31].mxu0 }
 0x1ed   :  { %v651_v22 = vadd.f32 %v1070_v11, %v546_v13  ;;  %v1017_v23 = vadd.f32 %v1016_v21, %v1015_v18  ;;  %v1072_v24 = vpop.f32.mrb[31].mxu1  ;;  %1146 = vmatmul.mubr.f32.gmra.mrb[36].mxu0 %v664_v12 }
 0x1ee   :  { %v1073_v25 = vadd.f32 %v1072_v24, %v1071_v20 }
 0x1ef   :  { %v665_v26 = vmax.f32 %v651_v22, 0.0  ;;  %v551_v27 = vadd.f32 %v1017_v23, %v1638_v19 }
 0x1f1   :  { %v656_v28 = vadd.f32 %v1073_v25, %v551_v27  ;;  %1148 = vmatprep.mubr.f32.mxu0 %v665_v26 }
 0x1f3   :  { %v666_v29 = vmax.f32 %v656_v28, 0.0 }
 0x1f5   :  { %1149 = vmatmul.mubr.f32.gmra.mrb[38].mxu0 %v666_v29 }
 0x25a   :  { %v808_v62 = vpop.permute.xlu0 %807 }
 0x25b   :  { %v813_v63 = vrot.slane %v808_v62, %v77_v9 }
 0x2b0   :  { %v1141_v34 = vpop.f32.mrb[32].mxu0 }
 0x2b1   :  { %v762_v35 = vadd.f32 %v1141_v34, %v951_v33  ;;  %v756_v19 = vpop.f32.mrb[33].mxu0 }
 0x2b2   :  { %v757_v36 = vadd.f32 %v951_v33, %v756_v19 }
 0x2b3   :  { %v796_v37 = vmax.f32 %v762_v35, 0.0 }
 0x2b4   :  { %v795_v38 = vmax.f32 %v757_v36, 0.0 }
 0x2b6   :  { %v1283_v1 = vpack.c.bf16 %v796_v37, %v795_v38 }
 0x2b8   :  { %v1144_v40 = vpop.f32.mrb[34].mxu0  ;;  %1285 = vmatpush3.bf16.xpose.msk.msra.mxu1 %vm1654_vm2, %v1283_v1 }
 0x2b9   :  { %v772_v41 = vadd.f32 %v1144_v40, %v951_v33  ;;  %v766_v42 = vpop.f32.mrb[35].mxu0  ;;  %1286 = vmatprep.subr.bf16.mxu1 %v1363_v30 }
 0x2ba   :  { %v767_v43 = vadd.f32 %v951_v33, %v766_v42 }
 0x2bb   :  { %v798_v44 = vmax.f32 %v772_v41, 0.0 }
 0x2bc   :  { %v797_v45 = vmax.f32 %v767_v43, 0.0 }
 0x2be   :  { %v1287_v46 = vpack.c.bf16 %v798_v44, %v797_v45 }
 0x2c0   :  { %v1147_v47 = vpop.f32.mrb[36].mxu0  ;;  %1289 = vmatpush3.bf16.xpose.msk.msra.mxu1 %vm1654_vm2, %v1287_v46 }
 0x2c1   :  { %v782_v48 = vadd.f32 %v1147_v47, %v951_v33  ;;  %v776_v49 = vpop.f32.mrb[37].mxu0  ;;  %1290 = vmatprep.subr.bf16.mxu1 %v1363_v30 }
 0x2c2   :  { %v777_v50 = vadd.f32 %v951_v33, %v776_v49 }
 0x2c3   :  { %v800_v51 = vmax.f32 %v782_v48, 0.0 }
 0x2c4   :  { %v799_v52 = vmax.f32 %v777_v50, 0.0 }
 0x2c6   :  { %v1291_v53 = vpack.c.bf16 %v800_v51, %v799_v52 }
 0x2c8   :  { %v1150_v54 = vpop.f32.mrb[38].mxu0  ;;  %1293 = vmatpush3.bf16.xpose.msk.msra.mxu1 %vm1654_vm2, %v1291_v53 }
 0x2c9   :  { %v792_v55 = vadd.f32 %v1150_v54, %v951_v33  ;;  %v786_v56 = vpop.f32.mrb[39].mxu0  ;;  %1294 = vmatprep.subr.bf16.mxu1 %v1363_v30 }
 0x2ca   :  { %v787_v57 = vadd.f32 %v951_v33, %v786_v56 }
 0x2cb   :  { %v802_v58 = vmax.f32 %v792_v55, 0.0 }
 0x2cc   :  { %v801_v59 = vmax.f32 %v787_v57, 0.0 }
 0x2ce   :  { %v1295_v60 = vpack.c.bf16 %v802_v58, %v801_v59 }
 0x2d0   :  { %1297 = vmatpush3.bf16.xpose.msk.msra.mxu1 %vm1654_vm2, %v1295_v60 }
 0x2d7   :  { %1168 = vmatmul.mubr.msk.f32.vlgmr.msra.gmra.mrb[32].mxu1 %vm95_vm0, %v803_v61 }
 0x3aa   :  { %v907_v0 = vpop.f32.mrb[32].mxu1 }
 0x3ab   :  { %v908_v2 = vadd.f32 %v907_v0, %v813_v63  ;;  %v1169_v3 = vpop.f32.mrb[33].mxu1 }
 0x3ad   :  { %v961_v4 = vmul.f32 -1.442695, %v908_v2 }
 0x3af   :  { %1307 = vpow2.f32 %v961_v4 }
 0x3b9   :  { %v1308_v5 = vpop.eup %1307 }
 0x3ba   :  { %v914_v14 = vadd.f32 1.0, %v1308_v5 }
 0x3bc   :  { %1309 = vrcp.f32 %v914_v14 }
 0x3c6   :  { %v1310_v15 = vpop.eup %1309 }
 0x3c7   :  { %918 = vst.msk [vmem:[#allocation6] sm:$0x1] %vm917_vm3, %v1310_v15 }
 0x3c8   :  { %1344 = shalt.err (!%p1341_p12)
}
 0x3c9   :  { %s1345_s16 = scalar_lea.hbm %s1693_s9, 16 }
 0x3ca   :  { %p1346_p13 = scmp.ne.s32.totalorder %s1693_s9, %s1345_s16  ;;  %p1349_p0 = scmp.lt.u32.totalorder %s1345_s16, %s1693_s9 }
 0x3cc   :  { %p1351_p1 = pnand %p1349_p0, %p1346_p13 }
 0x3ce   :  { %1354 = shalt.err (!%p1351_p1)
}
 0x3cf   :  { %928 = dma.vmem_to_hbm [thread:$0]  %s926_s13, 16, %s1693_s9, [#allocation5]  }
 0x3d0   :  { %1357 = dma.done.wait [#allocation5], 16  }
 0x3d1   :  { %1358 = vsyncadd [#allocation5], 4294967280 }
 0x3d2   :  { %932 = vsyncpa [#allocation4], 1 }
 0x3d3   :  { %933 = vsyncpa [#allocation5], 1 }

</bundles_post_ra>
